<compile_context>
chip_gen: v6e
topology: v6e:2x2x1
jax: 0.10.0
libtpu: 0.0.40
codegen_flags: <defaults>
</compile_context>

<pallas_src>
import numpy as np
import jax
import jax.numpy as jnp
from jax.experimental import pallas as pl
from jax.experimental.pallas import tpu as pltpu


def cosine_beta_schedule(timesteps, s=0.008):
    steps = timesteps + 1
    x = np.linspace(0, steps, steps)
    alphas_cumprod = np.cos((x / steps + s) / (1 + s) * np.pi * 0.5) ** 2
    alphas_cumprod = alphas_cumprod / alphas_cumprod[0]
    betas = 1 - alphas_cumprod[1:] / alphas_cumprod[:-1]
    return np.clip(betas, a_min=0, a_max=0.999)


def _diffusion_l1_kernel(sac_ref, somac_ref,      # SMEM (B,)  per-batch sqrt coeffs
                         w_ref, b_ref,            # SMEM (C,C), (C,)  pointwise conv
                         x_ref, noise_ref,        # VMEM (B*C, tile_s)
                         out_ref):                # VMEM (1, tile_s) lane-dense partial
    Bn = sac_ref.shape[0]
    Cn = w_ref.shape[0]

    partial = jnp.zeros(out_ref.shape, jnp.float32)

    # Fully unrolled over (batch, channel): B*C is tiny and static. All row ops
    # are (1, tile_s) VPU FMAs with scalar operands splat from SMEM.
    for b in range(Bn):
        sac = sac_ref[b]        # sqrt_alphas_cumprod[t_b]
        somac = somac_ref[b]    # sqrt_one_minus_alphas_cumprod[t_b]

        noise_rows = [
            noise_ref[b * Cn + j: b * Cn + j + 1, :].astype(jnp.float32)
            for j in range(Cn)
        ]
        # q_sample rows for this batch element
        xn_rows = [
            sac * x_ref[b * Cn + j: b * Cn + j + 1, :].astype(jnp.float32)
            + somac * noise_rows[j]
            for j in range(Cn)
        ]

        for i in range(Cn):
            # denoise_fn: pointwise channel mix  x_recon[i] = sum_j w[i,j]*x_noisy[j] + bias[i]
            recon = b_ref[i] + w_ref[i, 0] * xn_rows[0]
            for j in range(1, Cn):
                recon = recon + w_ref[i, j] * xn_rows[j]
            # mask == ones_like(x) in forward(): x_recon*mask + noise*(1-mask) == x_recon
            partial = partial + jnp.abs(noise_rows[i] - recon)

    out_ref[...] = partial


def _pick_tile_s(S, target):
    """Largest multiple of 128 that divides S and is <= target (else full S)."""
    if S % 128 != 0:
        return S
    t = min(S, max(128, (target // 128) * 128))
    while S % t != 0:
        t -= 128
    return t


def gaussian_diffusion_forward(x, noise, t,
                               sqrt_alphas_cumprod,
                               sqrt_one_minus_alphas_cumprod,
                               w, bias, *,
                               tile_s=8192,
                               storage_dtype=jnp.float32):
    """x, noise: (B, C, D, H, W); t: (B,) int32.  Returns scalar L1 loss."""
    B, C, D, H, W = x.shape
    S = D * H * W
    R = B * C

    ts = _pick_tile_s(S, tile_s)
    num_tiles = S // ts
    # VMEM working set: 2 inputs x 2 pipeline buffers x (R, ts); stays far below
    # the 32 MiB scoped limit even at production volumes for these tile targets.

    # Fold (B, C) into the sublane/row axis; S on the lane axis.
    x_f = x.reshape(R, S).astype(storage_dtype)
    n_f = noise.reshape(R, S).astype(storage_dtype)

    # extract(a, t, shape): per-batch scalar gather done in plain JAX glue.
    sac_t = sqrt_alphas_cumprod[t].astype(jnp.float32)              # (B,)
    somac_t = sqrt_one_minus_alphas_cumprod[t].astype(jnp.float32)  # (B,)
    w_f = w.astype(jnp.float32)                                     # (C, C)
    bias_f = bias.reshape(C).astype(jnp.float32)                    # (C,)

    smem = pl.BlockSpec(memory_space=pltpu.MemorySpace.SMEM)
    row_spec = pl.BlockSpec((R, ts), lambda s: (0, s))

    partials = pl.pallas_call(
        _diffusion_l1_kernel,
        out_shape=jax.ShapeDtypeStruct((num_tiles, 1, ts), jnp.float32),
        grid_spec=pltpu.PrefetchScalarGridSpec(
            num_scalar_prefetch=0,
            grid=(num_tiles,),
            in_specs=[smem, smem, smem, smem, row_spec, row_spec],
            out_specs=pl.BlockSpec((None, 1, ts), lambda s: (s, 0, 0)),
        ),
        compiler_params=pltpu.CompilerParams(
            dimension_semantics=("parallel",),      # independent S-tiles
            vmem_limit_bytes=32 * 1024 * 1024,      # v7x-safe explicit scoped limit
        ),
    )(sac_t, somac_t, w_f, bias_f, x_f, n_f)

    # Final cross-tile / cross-lane reduce and mean in glue (f32).
    return jnp.sum(partials, dtype=jnp.float32) / jnp.float32(R * S)


def _reference_loss(x, noise, t, sac, somac, w, bias):
    B, C, D, H, W = x.shape
    S = D * H * W
    xf = x.reshape(B, C, S)
    nf = noise.reshape(B, C, S)
    mf = jnp.ones_like(xf)                       # mask = ones_like(x) in forward()
    sac_t = sac[t][:, None, None]
    somac_t = somac[t][:, None, None]
    x_noisy = sac_t * xf + somac_t * nf
    # Pointwise channel mix computed elementwise (avoids MXU default-precision
    # differences in the reference).
    x_recon = jnp.sum(w[None, :, :, None] * x_noisy[:, None, :, :], axis=2) \
        + bias[None, :, None]
    x_recon = x_recon * mf + nf * (1.0 - mf)
    return jnp.mean(jnp.abs(nf - x_recon))


if __name__ == "__main__":
    # Small shapes consistent with the 3D medical-image forward: (b, c, d, h, w)
    B, C, D, H, W = 2, 4, 8, 16, 16
    timesteps = 250

    # Diffusion schedule buffers (numpy, as in __init__)
    betas = cosine_beta_schedule(timesteps)
    alphas = 1.0 - betas
    alphas_cumprod = np.cumprod(alphas, axis=0)
    sqrt_alphas_cumprod = jnp.asarray(np.sqrt(alphas_cumprod), dtype=jnp.float32)
    sqrt_one_minus_alphas_cumprod = jnp.asarray(
        np.sqrt(1.0 - alphas_cumprod), dtype=jnp.float32)

    key = jax.random.PRNGKey(0)
    k_x, k_t, k_noise, k_w, k_b = jax.random.split(key, 5)

    x = jax.random.normal(k_x, (B, C, D, H, W), dtype=jnp.float32)
    noise = jax.random.normal(k_noise, (B, C, D, H, W), dtype=jnp.float32)
    t = jax.random.randint(k_t, (B,), 0, timesteps).astype(jnp.int32)

    # Deterministic synthetic denoise_fn params (pointwise conv over channels)
    w = jax.random.normal(k_w, (C, C), dtype=jnp.float32) * 0.1 \
        + jnp.eye(C, dtype=jnp.float32)
    bias = jax.random.normal(k_b, (C,), dtype=jnp.float32) * 0.01

    # --- f32 streaming path (exact check against f32 reference) ---
    loss = gaussian_diffusion_forward(
        x, noise, t, sqrt_alphas_cumprod, sqrt_one_minus_alphas_cumprod,
        w, bias, tile_s=1024, storage_dtype=jnp.float32)
    loss = jax.block_until_ready(loss)
    ref = jax.block_until_ready(_reference_loss(
        x, noise, t, sqrt_alphas_cumprod, sqrt_one_minus_alphas_cumprod, w, bias))
    if not np.allclose(np.asarray(loss), np.asarray(ref), rtol=1e-4, atol=1e-5):
        raise AssertionError(f"f32 mismatch: pallas={loss} ref={ref}")

    # --- bf16 streaming path (halves HBM traffic; arithmetic stays f32 in-kernel) ---
    loss_bf16 = gaussian_diffusion_forward(
        x, noise, t, sqrt_alphas_cumprod, sqrt_one_minus_alphas_cumprod,
        w, bias, tile_s=1024, storage_dtype=jnp.bfloat16)
    loss_bf16 = jax.block_until_ready(loss_bf16)
    xq = x.astype(jnp.bfloat16).astype(jnp.float32)
    nq = noise.astype(jnp.bfloat16).astype(jnp.float32)
    ref_bf16 = jax.block_until_ready(_reference_loss(
        xq, nq, t, sqrt_alphas_cumprod, sqrt_one_minus_alphas_cumprod, w, bias))
    if not np.allclose(np.asarray(loss_bf16), np.asarray(ref_bf16),
                       rtol=1e-3, atol=1e-4):
        raise AssertionError(f"bf16 mismatch: pallas={loss_bf16} ref={ref_bf16}")

    print("KERNEL_OK")
</pallas_src>

<mosaic_0001>
module attributes {stable_mosaic.version = 11 : i64} {
  func.func @_diffusion_l1_kernel(%arg0: i32, %arg1: memref<2xf32, #tpu.memory_space<smem>>, %arg2: memref<2xf32, #tpu.memory_space<smem>>, %arg3: memref<4x4xf32, #tpu.memory_space<smem>>, %arg4: memref<4xf32, #tpu.memory_space<smem>>, %arg5: memref<8x1024xf32, #tpu.memory_space<vmem>>, %arg6: memref<8x1024xf32, #tpu.memory_space<vmem>>, %arg7: memref<1x1x1024xf32, #tpu.memory_space<vmem>>) attributes {dimension_semantics = [#tpu.dimension_semantics<parallel>], iteration_bounds = array<i64: 2>, scalar_prefetch = 0 : i64, scratch_operands = 0 : i64, tpu.core_type = #tpu.core_type<tc>, window_params = [{transform_indices = @transform_0, window_bounds = array<i64: 2>}, {transform_indices = @transform_1, window_bounds = array<i64: 2>}, {transform_indices = @transform_2, window_bounds = array<i64: 4, 4>}, {transform_indices = @transform_3, window_bounds = array<i64: 4>}, {transform_indices = @transform_4, window_bounds = array<i64: 8, 1024>}, {transform_indices = @transform_5, window_bounds = array<i64: 8, 1024>}, {transform_indices = @transform_6, window_bounds = array<i64: 1, 1, 1024>}]} {
    %cst = arith.constant 0.000000e+00 : f32
    %0 = vector.broadcast %cst : f32 to vector<1x1024xf32>
    %c0 = arith.constant 0 : index
    %1 = memref.load %arg1[%c0] : memref<2xf32, #tpu.memory_space<smem>>
    %c0_0 = arith.constant 0 : index
    %2 = memref.load %arg2[%c0_0] : memref<2xf32, #tpu.memory_space<smem>>
    %c0_1 = arith.constant 0 : index
    %c0_2 = arith.constant 0 : index
    %3 = vector.load %arg6[%c0_1, %c0_2] : memref<8x1024xf32, #tpu.memory_space<vmem>>, vector<1x1024xf32>
    %c1 = arith.constant 1 : index
    %c0_3 = arith.constant 0 : index
    %4 = vector.load %arg6[%c1, %c0_3] : memref<8x1024xf32, #tpu.memory_space<vmem>>, vector<1x1024xf32>
    %c2 = arith.constant 2 : index
    %c0_4 = arith.constant 0 : index
    %5 = vector.load %arg6[%c2, %c0_4] : memref<8x1024xf32, #tpu.memory_space<vmem>>, vector<1x1024xf32>
    %c3 = arith.constant 3 : index
    %c0_5 = arith.constant 0 : index
    %6 = vector.load %arg6[%c3, %c0_5] : memref<8x1024xf32, #tpu.memory_space<vmem>>, vector<1x1024xf32>
    %c0_6 = arith.constant 0 : index
    %c0_7 = arith.constant 0 : index
    %7 = vector.load %arg5[%c0_6, %c0_7] : memref<8x1024xf32, #tpu.memory_space<vmem>>, vector<1x1024xf32>
    %8 = vector.broadcast %1 : f32 to vector<1x1024xf32>
    %9 = arith.mulf %8, %7 : vector<1x1024xf32>
    %10 = vector.broadcast %2 : f32 to vector<1x1024xf32>
    %11 = arith.mulf %10, %3 : vector<1x1024xf32>
    %12 = arith.addf %9, %11 : vector<1x1024xf32>
    %c1_8 = arith.constant 1 : index
    %c0_9 = arith.constant 0 : index
    %13 = vector.load %arg5[%c1_8, %c0_9] : memref<8x1024xf32, #tpu.memory_space<vmem>>, vector<1x1024xf32>
    %14 = vector.broadcast %1 : f32 to vector<1x1024xf32>
    %15 = arith.mulf %14, %13 : vector<1x1024xf32>
    %16 = vector.broadcast %2 : f32 to vector<1x1024xf32>
    %17 = arith.mulf %16, %4 : vector<1x1024xf32>
    %18 = arith.addf %15, %17 : vector<1x1024xf32>
    %c2_10 = arith.constant 2 : index
    %c0_11 = arith.constant 0 : index
    %19 = vector.load %arg5[%c2_10, %c0_11] : memref<8x1024xf32, #tpu.memory_space<vmem>>, vector<1x1024xf32>
    %20 = vector.broadcast %1 : f32 to vector<1x1024xf32>
    %21 = arith.mulf %20, %19 : vector<1x1024xf32>
    %22 = vector.broadcast %2 : f32 to vector<1x1024xf32>
    %23 = arith.mulf %22, %5 : vector<1x1024xf32>
    %24 = arith.addf %21, %23 : vector<1x1024xf32>
    %c3_12 = arith.constant 3 : index
    %c0_13 = arith.constant 0 : index
    %25 = vector.load %arg5[%c3_12, %c0_13] : memref<8x1024xf32, #tpu.memory_space<vmem>>, vector<1x1024xf32>
    %26 = vector.broadcast %1 : f32 to vector<1x1024xf32>
    %27 = arith.mulf %26, %25 : vector<1x1024xf32>
    %28 = vector.broadcast %2 : f32 to vector<1x1024xf32>
    %29 = arith.mulf %28, %6 : vector<1x1024xf32>
    %30 = arith.addf %27, %29 : vector<1x1024xf32>
    %c0_14 = arith.constant 0 : index
    %31 = memref.load %arg4[%c0_14] : memref<4xf32, #tpu.memory_space<smem>>
    %c0_15 = arith.constant 0 : index
    %c0_16 = arith.constant 0 : index
    %32 = memref.load %arg3[%c0_15, %c0_16] : memref<4x4xf32, #tpu.memory_space<smem>>
    %33 = vector.broadcast %32 : f32 to vector<1x1024xf32>
    %34 = arith.mulf %33, %12 : vector<1x1024xf32>
    %35 = vector.broadcast %31 : f32 to vector<1x1024xf32>
    %36 = arith.addf %35, %34 : vector<1x1024xf32>
    %c0_17 = arith.constant 0 : index
    %c1_18 = arith.constant 1 : index
    %37 = memref.load %arg3[%c0_17, %c1_18] : memref<4x4xf32, #tpu.memory_space<smem>>
    %38 = vector.broadcast %37 : f32 to vector<1x1024xf32>
    %39 = arith.mulf %38, %18 : vector<1x1024xf32>
    %40 = arith.addf %36, %39 : vector<1x1024xf32>
    %c0_19 = arith.constant 0 : index
    %c2_20 = arith.constant 2 : index
    %41 = memref.load %arg3[%c0_19, %c2_20] : memref<4x4xf32, #tpu.memory_space<smem>>
    %42 = vector.broadcast %41 : f32 to vector<1x1024xf32>
    %43 = arith.mulf %42, %24 : vector<1x1024xf32>
    %44 = arith.addf %40, %43 : vector<1x1024xf32>
    %c0_21 = arith.constant 0 : index
    %c3_22 = arith.constant 3 : index
    %45 = memref.load %arg3[%c0_21, %c3_22] : memref<4x4xf32, #tpu.memory_space<smem>>
    %46 = vector.broadcast %45 : f32 to vector<1x1024xf32>
    %47 = arith.mulf %46, %30 : vector<1x1024xf32>
    %48 = arith.addf %44, %47 : vector<1x1024xf32>
    %49 = arith.subf %3, %48 : vector<1x1024xf32>
    %50 = math.absf %49 : vector<1x1024xf32>
    %51 = arith.addf %0, %50 : vector<1x1024xf32>
    %c1_23 = arith.constant 1 : index
    %52 = memref.load %arg4[%c1_23] : memref<4xf32, #tpu.memory_space<smem>>
    %c1_24 = arith.constant 1 : index
    %c0_25 = arith.constant 0 : index
    %53 = memref.load %arg3[%c1_24, %c0_25] : memref<4x4xf32, #tpu.memory_space<smem>>
    %54 = vector.broadcast %53 : f32 to vector<1x1024xf32>
    %55 = arith.mulf %54, %12 : vector<1x1024xf32>
    %56 = vector.broadcast %52 : f32 to vector<1x1024xf32>
    %57 = arith.addf %56, %55 : vector<1x1024xf32>
    %c1_26 = arith.constant 1 : index
    %c1_27 = arith.constant 1 : index
    %58 = memref.load %arg3[%c1_26, %c1_27] : memref<4x4xf32, #tpu.memory_space<smem>>
    %59 = vector.broadcast %58 : f32 to vector<1x1024xf32>
    %60 = arith.mulf %59, %18 : vector<1x1024xf32>
    %61 = arith.addf %57, %60 : vector<1x1024xf32>
    %c1_28 = arith.constant 1 : index
    %c2_29 = arith.constant 2 : index
    %62 = memref.load %arg3[%c1_28, %c2_29] : memref<4x4xf32, #tpu.memory_space<smem>>
    %63 = vector.broadcast %62 : f32 to vector<1x1024xf32>
    %64 = arith.mulf %63, %24 : vector<1x1024xf32>
    %65 = arith.addf %61, %64 : vector<1x1024xf32>
    %c1_30 = arith.constant 1 : index
    %c3_31 = arith.constant 3 : index
    %66 = memref.load %arg3[%c1_30, %c3_31] : memref<4x4xf32, #tpu.memory_space<smem>>
    %67 = vector.broadcast %66 : f32 to vector<1x1024xf32>
    %68 = arith.mulf %67, %30 : vector<1x1024xf32>
    %69 = arith.addf %65, %68 : vector<1x1024xf32>
    %70 = arith.subf %4, %69 : vector<1x1024xf32>
    %71 = math.absf %70 : vector<1x1024xf32>
    %72 = arith.addf %51, %71 : vector<1x1024xf32>
    %c2_32 = arith.constant 2 : index
    %73 = memref.load %arg4[%c2_32] : memref<4xf32, #tpu.memory_space<smem>>
    %c2_33 = arith.constant 2 : index
    %c0_34 = arith.constant 0 : index
    %74 = memref.load %arg3[%c2_33, %c0_34] : memref<4x4xf32, #tpu.memory_space<smem>>
    %75 = vector.broadcast %74 : f32 to vector<1x1024xf32>
    %76 = arith.mulf %75, %12 : vector<1x1024xf32>
    %77 = vector.broadcast %73 : f32 to vector<1x1024xf32>
    %78 = arith.addf %77, %76 : vector<1x1024xf32>
    %c2_35 = arith.constant 2 : index
    %c1_36 = arith.constant 1 : index
    %79 = memref.load %arg3[%c2_35, %c1_36] : memref<4x4xf32, #tpu.memory_space<smem>>
    %80 = vector.broadcast %79 : f32 to vector<1x1024xf32>
    %81 = arith.mulf %80, %18 : vector<1x1024xf32>
    %82 = arith.addf %78, %81 : vector<1x1024xf32>
    %c2_37 = arith.constant 2 : index
    %c2_38 = arith.constant 2 : index
    %83 = memref.load %arg3[%c2_37, %c2_38] : memref<4x4xf32, #tpu.memory_space<smem>>
    %84 = vector.broadcast %83 : f32 to vector<1x1024xf32>
    %85 = arith.mulf %84, %24 : vector<1x1024xf32>
    %86 = arith.addf %82, %85 : vector<1x1024xf32>
    %c2_39 = arith.constant 2 : index
    %c3_40 = arith.constant 3 : index
    %87 = memref.load %arg3[%c2_39, %c3_40] : memref<4x4xf32, #tpu.memory_space<smem>>
    %88 = vector.broadcast %87 : f32 to vector<1x1024xf32>
    %89 = arith.mulf %88, %30 : vector<1x1024xf32>
    %90 = arith.addf %86, %89 : vector<1x1024xf32>
    %91 = arith.subf %5, %90 : vector<1x1024xf32>
    %92 = math.absf %91 : vector<1x1024xf32>
    %93 = arith.addf %72, %92 : vector<1x1024xf32>
    %c3_41 = arith.constant 3 : index
    %94 = memref.load %arg4[%c3_41] : memref<4xf32, #tpu.memory_space<smem>>
    %c3_42 = arith.constant 3 : index
    %c0_43 = arith.constant 0 : index
    %95 = memref.load %arg3[%c3_42, %c0_43] : memref<4x4xf32, #tpu.memory_space<smem>>
    %96 = vector.broadcast %95 : f32 to vector<1x1024xf32>
    %97 = arith.mulf %96, %12 : vector<1x1024xf32>
    %98 = vector.broadcast %94 : f32 to vector<1x1024xf32>
    %99 = arith.addf %98, %97 : vector<1x1024xf32>
    %c3_44 = arith.constant 3 : index
    %c1_45 = arith.constant 1 : index
    %100 = memref.load %arg3[%c3_44, %c1_45] : memref<4x4xf32, #tpu.memory_space<smem>>
    %101 = vector.broadcast %100 : f32 to vector<1x1024xf32>
    %102 = arith.mulf %101, %18 : vector<1x1024xf32>
    %103 = arith.addf %99, %102 : vector<1x1024xf32>
    %c3_46 = arith.constant 3 : index
    %c2_47 = arith.constant 2 : index
    %104 = memref.load %arg3[%c3_46, %c2_47] : memref<4x4xf32, #tpu.memory_space<smem>>
    %105 = vector.broadcast %104 : f32 to vector<1x1024xf32>
    %106 = arith.mulf %105, %24 : vector<1x1024xf32>
    %107 = arith.addf %103, %106 : vector<1x1024xf32>
    %c3_48 = arith.constant 3 : index
    %c3_49 = arith.constant 3 : index
    %108 = memref.load %arg3[%c3_48, %c3_49] : memref<4x4xf32, #tpu.memory_space<smem>>
    %109 = vector.broadcast %108 : f32 to vector<1x1024xf32>
    %110 = arith.mulf %109, %30 : vector<1x1024xf32>
    %111 = arith.addf %107, %110 : vector<1x1024xf32>
    %112 = arith.subf %6, %111 : vector<1x1024xf32>
    %113 = math.absf %112 : vector<1x1024xf32>
    %114 = arith.addf %93, %113 : vector<1x1024xf32>
    %c1_50 = arith.constant 1 : index
    %115 = memref.load %arg1[%c1_50] : memref<2xf32, #tpu.memory_space<smem>>
    %c1_51 = arith.constant 1 : index
    %116 = memref.load %arg2[%c1_51] : memref<2xf32, #tpu.memory_space<smem>>
    %c4 = arith.constant 4 : index
    %c0_52 = arith.constant 0 : index
    %117 = vector.load %arg6[%c4, %c0_52] : memref<8x1024xf32, #tpu.memory_space<vmem>>, vector<1x1024xf32>
    %c5 = arith.constant 5 : index
    %c0_53 = arith.constant 0 : index
    %118 = vector.load %arg6[%c5, %c0_53] : memref<8x1024xf32, #tpu.memory_space<vmem>>, vector<1x1024xf32>
    %c6 = arith.constant 6 : index
    %c0_54 = arith.constant 0 : index
    %119 = vector.load %arg6[%c6, %c0_54] : memref<8x1024xf32, #tpu.memory_space<vmem>>, vector<1x1024xf32>
    %c7 = arith.constant 7 : index
    %c0_55 = arith.constant 0 : index
    %120 = vector.load %arg6[%c7, %c0_55] : memref<8x1024xf32, #tpu.memory_space<vmem>>, vector<1x1024xf32>
    %c4_56 = arith.constant 4 : index
    %c0_57 = arith.constant 0 : index
    %121 = vector.load %arg5[%c4_56, %c0_57] : memref<8x1024xf32, #tpu.memory_space<vmem>>, vector<1x1024xf32>
    %122 = vector.broadcast %115 : f32 to vector<1x1024xf32>
    %123 = arith.mulf %122, %121 : vector<1x1024xf32>
    %124 = vector.broadcast %116 : f32 to vector<1x1024xf32>
    %125 = arith.mulf %124, %117 : vector<1x1024xf32>
    %126 = arith.addf %123, %125 : vector<1x1024xf32>
    %c5_58 = arith.constant 5 : index
    %c0_59 = arith.constant 0 : index
    %127 = vector.load %arg5[%c5_58, %c0_59] : memref<8x1024xf32, #tpu.memory_space<vmem>>, vector<1x1024xf32>
    %128 = vector.broadcast %115 : f32 to vector<1x1024xf32>
    %129 = arith.mulf %128, %127 : vector<1x1024xf32>
    %130 = vector.broadcast %116 : f32 to vector<1x1024xf32>
    %131 = arith.mulf %130, %118 : vector<1x1024xf32>
    %132 = arith.addf %129, %131 : vector<1x1024xf32>
    %c6_60 = arith.constant 6 : index
    %c0_61 = arith.constant 0 : index
    %133 = vector.load %arg5[%c6_60, %c0_61] : memref<8x1024xf32, #tpu.memory_space<vmem>>, vector<1x1024xf32>
    %134 = vector.broadcast %115 : f32 to vector<1x1024xf32>
    %135 = arith.mulf %134, %133 : vector<1x1024xf32>
    %136 = vector.broadcast %116 : f32 to vector<1x1024xf32>
    %137 = arith.mulf %136, %119 : vector<1x1024xf32>
    %138 = arith.addf %135, %137 : vector<1x1024xf32>
    %c7_62 = arith.constant 7 : index
    %c0_63 = arith.constant 0 : index
    %139 = vector.load %arg5[%c7_62, %c0_63] : memref<8x1024xf32, #tpu.memory_space<vmem>>, vector<1x1024xf32>
    %140 = vector.broadcast %115 : f32 to vector<1x1024xf32>
    %141 = arith.mulf %140, %139 : vector<1x1024xf32>
    %142 = vector.broadcast %116 : f32 to vector<1x1024xf32>
    %143 = arith.mulf %142, %120 : vector<1x1024xf32>
    %144 = arith.addf %141, %143 : vector<1x1024xf32>
    %c0_64 = arith.constant 0 : index
    %145 = memref.load %arg4[%c0_64] : memref<4xf32, #tpu.memory_space<smem>>
    %c0_65 = arith.constant 0 : index
    %c0_66 = arith.constant 0 : index
    %146 = memref.load %arg3[%c0_65, %c0_66] : memref<4x4xf32, #tpu.memory_space<smem>>
    %147 = vector.broadcast %146 : f32 to vector<1x1024xf32>
    %148 = arith.mulf %147, %126 : vector<1x1024xf32>
    %149 = vector.broadcast %145 : f32 to vector<1x1024xf32>
    %150 = arith.addf %149, %148 : vector<1x1024xf32>
    %c0_67 = arith.constant 0 : index
    %c1_68 = arith.constant 1 : index
    %151 = memref.load %arg3[%c0_67, %c1_68] : memref<4x4xf32, #tpu.memory_space<smem>>
    %152 = vector.broadcast %151 : f32 to vector<1x1024xf32>
    %153 = arith.mulf %152, %132 : vector<1x1024xf32>
    %154 = arith.addf %150, %153 : vector<1x1024xf32>
    %c0_69 = arith.constant 0 : index
    %c2_70 = arith.constant 2 : index
    %155 = memref.load %arg3[%c0_69, %c2_70] : memref<4x4xf32, #tpu.memory_space<smem>>
    %156 = vector.broadcast %155 : f32 to vector<1x1024xf32>
    %157 = arith.mulf %156, %138 : vector<1x1024xf32>
    %158 = arith.addf %154, %157 : vector<1x1024xf32>
    %c0_71 = arith.constant 0 : index
    %c3_72 = arith.constant 3 : index
    %159 = memref.load %arg3[%c0_71, %c3_72] : memref<4x4xf32, #tpu.memory_space<smem>>
    %160 = vector.broadcast %159 : f32 to vector<1x1024xf32>
    %161 = arith.mulf %160, %144 : vector<1x1024xf32>
    %162 = arith.addf %158, %161 : vector<1x1024xf32>
    %163 = arith.subf %117, %162 : vector<1x1024xf32>
    %164 = math.absf %163 : vector<1x1024xf32>
    %165 = arith.addf %114, %164 : vector<1x1024xf32>
    %c1_73 = arith.constant 1 : index
    %166 = memref.load %arg4[%c1_73] : memref<4xf32, #tpu.memory_space<smem>>
    %c1_74 = arith.constant 1 : index
    %c0_75 = arith.constant 0 : index
    %167 = memref.load %arg3[%c1_74, %c0_75] : memref<4x4xf32, #tpu.memory_space<smem>>
    %168 = vector.broadcast %167 : f32 to vector<1x1024xf32>
    %169 = arith.mulf %168, %126 : vector<1x1024xf32>
    %170 = vector.broadcast %166 : f32 to vector<1x1024xf32>
    %171 = arith.addf %170, %169 : vector<1x1024xf32>
    %c1_76 = arith.constant 1 : index
    %c1_77 = arith.constant 1 : index
    %172 = memref.load %arg3[%c1_76, %c1_77] : memref<4x4xf32, #tpu.memory_space<smem>>
    %173 = vector.broadcast %172 : f32 to vector<1x1024xf32>
    %174 = arith.mulf %173, %132 : vector<1x1024xf32>
    %175 = arith.addf %171, %174 : vector<1x1024xf32>
    %c1_78 = arith.constant 1 : index
    %c2_79 = arith.constant 2 : index
    %176 = memref.load %arg3[%c1_78, %c2_79] : memref<4x4xf32, #tpu.memory_space<smem>>
    %177 = vector.broadcast %176 : f32 to vector<1x1024xf32>
    %178 = arith.mulf %177, %138 : vector<1x1024xf32>
    %179 = arith.addf %175, %178 : vector<1x1024xf32>
    %c1_80 = arith.constant 1 : index
    %c3_81 = arith.constant 3 : index
    %180 = memref.load %arg3[%c1_80, %c3_81] : memref<4x4xf32, #tpu.memory_space<smem>>
    %181 = vector.broadcast %180 : f32 to vector<1x1024xf32>
    %182 = arith.mulf %181, %144 : vector<1x1024xf32>
    %183 = arith.addf %179, %182 : vector<1x1024xf32>
    %184 = arith.subf %118, %183 : vector<1x1024xf32>
    %185 = math.absf %184 : vector<1x1024xf32>
    %186 = arith.addf %165, %185 : vector<1x1024xf32>
    %c2_82 = arith.constant 2 : index
    %187 = memref.load %arg4[%c2_82] : memref<4xf32, #tpu.memory_space<smem>>
    %c2_83 = arith.constant 2 : index
    %c0_84 = arith.constant 0 : index
    %188 = memref.load %arg3[%c2_83, %c0_84] : memref<4x4xf32, #tpu.memory_space<smem>>
    %189 = vector.broadcast %188 : f32 to vector<1x1024xf32>
    %190 = arith.mulf %189, %126 : vector<1x1024xf32>
    %191 = vector.broadcast %187 : f32 to vector<1x1024xf32>
    %192 = arith.addf %191, %190 : vector<1x1024xf32>
    %c2_85 = arith.constant 2 : index
    %c1_86 = arith.constant 1 : index
    %193 = memref.load %arg3[%c2_85, %c1_86] : memref<4x4xf32, #tpu.memory_space<smem>>
    %194 = vector.broadcast %193 : f32 to vector<1x1024xf32>
    %195 = arith.mulf %194, %132 : vector<1x1024xf32>
    %196 = arith.addf %192, %195 : vector<1x1024xf32>
    %c2_87 = arith.constant 2 : index
    %c2_88 = arith.constant 2 : index
    %197 = memref.load %arg3[%c2_87, %c2_88] : memref<4x4xf32, #tpu.memory_space<smem>>
    %198 = vector.broadcast %197 : f32 to vector<1x1024xf32>
    %199 = arith.mulf %198, %138 : vector<1x1024xf32>
    %200 = arith.addf %196, %199 : vector<1x1024xf32>
    %c2_89 = arith.constant 2 : index
    %c3_90 = arith.constant 3 : index
    %201 = memref.load %arg3[%c2_89, %c3_90] : memref<4x4xf32, #tpu.memory_space<smem>>
    %202 = vector.broadcast %201 : f32 to vector<1x1024xf32>
    %203 = arith.mulf %202, %144 : vector<1x1024xf32>
    %204 = arith.addf %200, %203 : vector<1x1024xf32>
    %205 = arith.subf %119, %204 : vector<1x1024xf32>
    %206 = math.absf %205 : vector<1x1024xf32>
    %207 = arith.addf %186, %206 : vector<1x1024xf32>
    %c3_91 = arith.constant 3 : index
    %208 = memref.load %arg4[%c3_91] : memref<4xf32, #tpu.memory_space<smem>>
    %c3_92 = arith.constant 3 : index
    %c0_93 = arith.constant 0 : index
    %209 = memref.load %arg3[%c3_92, %c0_93] : memref<4x4xf32, #tpu.memory_space<smem>>
    %210 = vector.broadcast %209 : f32 to vector<1x1024xf32>
    %211 = arith.mulf %210, %126 : vector<1x1024xf32>
    %212 = vector.broadcast %208 : f32 to vector<1x1024xf32>
    %213 = arith.addf %212, %211 : vector<1x1024xf32>
    %c3_94 = arith.constant 3 : index
    %c1_95 = arith.constant 1 : index
    %214 = memref.load %arg3[%c3_94, %c1_95] : memref<4x4xf32, #tpu.memory_space<smem>>
    %215 = vector.broadcast %214 : f32 to vector<1x1024xf32>
    %216 = arith.mulf %215, %132 : vector<1x1024xf32>
    %217 = arith.addf %213, %216 : vector<1x1024xf32>
    %c3_96 = arith.constant 3 : index
    %c2_97 = arith.constant 2 : index
    %218 = memref.load %arg3[%c3_96, %c2_97] : memref<4x4xf32, #tpu.memory_space<smem>>
    %219 = vector.broadcast %218 : f32 to vector<1x1024xf32>
    %220 = arith.mulf %219, %138 : vector<1x1024xf32>
    %221 = arith.addf %217, %220 : vector<1x1024xf32>
    %c3_98 = arith.constant 3 : index
    %c3_99 = arith.constant 3 : index
    %222 = memref.load %arg3[%c3_98, %c3_99] : memref<4x4xf32, #tpu.memory_space<smem>>
    %223 = vector.broadcast %222 : f32 to vector<1x1024xf32>
    %224 = arith.mulf %223, %144 : vector<1x1024xf32>
    %225 = arith.addf %221, %224 : vector<1x1024xf32>
    %226 = arith.subf %120, %225 : vector<1x1024xf32>
    %227 = math.absf %226 : vector<1x1024xf32>
    %228 = arith.addf %207, %227 : vector<1x1024xf32>
    %c0_100 = arith.constant 0 : index
    %c0_101 = arith.constant 0 : index
    %c0_102 = arith.constant 0 : index
    %229 = vector.load %arg7[%c0_100, %c0_101, %c0_102] : memref<1x1x1024xf32, #tpu.memory_space<vmem>>, vector<1x1x1024xf32>
    %230 = vector.shape_cast %229 : vector<1x1x1024xf32> to vector<1x1024xf32>
    %231 = vector.shape_cast %228 : vector<1x1024xf32> to vector<1x1x1024xf32>
    tpu.vector_store %arg7[%c0_100, %c0_101, %c0_102], %231 {strides = array<i32>} : memref<1x1x1024xf32, #tpu.memory_space<vmem>>, vector<1x1x1024xf32>,
    return
  }
  func.func @transform_0(%arg0: i32) -> i32 {
    %c0_i32 = arith.constant 0 : i32
    %c0_i32_0 = arith.constant 0 : i32
    return %c0_i32 : i32
  }
  func.func @transform_1(%arg0: i32) -> i32 {
    %c0_i32 = arith.constant 0 : i32
    %c0_i32_0 = arith.constant 0 : i32
    return %c0_i32 : i32
  }
  func.func @transform_2(%arg0: i32) -> (i32, i32) {
    %c0_i32 = arith.constant 0 : i32
    %c0_i32_0 = arith.constant 0 : i32
    %c0_i32_1 = arith.constant 0 : i32
    return %c0_i32, %c0_i32_0 : i32, i32
  }
  func.func @transform_3(%arg0: i32) -> i32 {
    %c0_i32 = arith.constant 0 : i32
    %c0_i32_0 = arith.constant 0 : i32
    return %c0_i32 : i32
  }
  func.func @transform_4(%arg0: i32) -> (i32, i32) {
    %c0_i32 = arith.constant 0 : i32
    %c0_i32_0 = arith.constant 0 : i32
    return %c0_i32, %arg0 : i32, i32
  }
  func.func @transform_5(%arg0: i32) -> (i32, i32) {
    %c0_i32 = arith.constant 0 : i32
    %c0_i32_0 = arith.constant 0 : i32
    return %c0_i32, %arg0 : i32, i32
  }
  func.func @transform_6(%arg0: i32) -> (i32, i32, i32) {
    %c0_i32 = arith.constant 0 : i32
    %c0_i32_0 = arith.constant 0 : i32
    %c0_i32_1 = arith.constant 0 : i32
    return %arg0, %c0_i32, %c0_i32_0 : i32, i32, i32
  }
}

</mosaic_0001>

<bundles_post_ra>
// kernel: tpu_custom_call.1
= control target key start
LH: loop header
LB: loop body
LE: loop exit
PB: predicated region body
PF: predicated region fallthrough
CT: control target
= control target key end

     0   :  { %s1590_s0 = inlined_call_operand.hbm [shape: f32[2], index: 0, kind: input, shape index: {}]   ;;  %s1591_s1 = inlined_call_operand.vmem [shape: f32[2], index: 1, kind: input, shape index: {}]   ;;  %s1592_s2 = inlined_call_operand.hbm [shape: f32[4,4], index: 2, kind: input, shape index: {}]   ;;  %s1593_s3 = inlined_call_operand.vmem [shape: f32[4], index: 3, kind: input, shape index: {}]   ;;  %s1594_s4 = inlined_call_operand.hbm [shape: f32[8,2048], index: 4, kind: input, shape index: {}]   ;;  %s1595_s5 = inlined_call_operand.hbm [shape: f32[8,2048], index: 5, kind: input, shape index: {}]   ;;  %s1596_s6 = inlined_call_operand.hbm [shape: f32[2,1,1024], index: 6, kind: output, shape index: {}]  }
   0x1   :  { %1606 = sst [smem:[#allocation27_spill]] %s1590_s0 }
   0x2   :  { %1607 = sst [smem:[#allocation28_spill]] %s1591_s1 }
   0x3   :  { %1608 = sst [smem:[#allocation29_spill]] %s1592_s2 }
   0x4   :  { %1609 = sst [smem:[#allocation30_spill]] %s1593_s3 }
   0x5   :  { %1610 = sst [smem:[#allocation31_spill]] %s1594_s4 }
   0x6   :  { %1611 = sst [smem:[#allocation32_spill]] %s1595_s5 }
   0x7   :  { %11 = vsyncpa [#allocation5], 0 }
   0x8   :  { %12 = vsyncpa [#allocation6], 0 }
   0x9   :  { %13 = vsyncpa [#allocation9], 0 }
   0xa   :  { %14 = vsyncpa [#allocation11], 0 }
   0xb   :  { %15 = vsyncpa [#allocation3], 0 }
   0xc   :  { %17 = vsyncpa [#allocation3 + $0x1], 0 }
   0xd   :  { %18 = vsyncpa [#allocation14], 0 }
   0xe   :  { %20 = vsyncpa [#allocation14 + $0x1], 0 }
   0xf   :  { %21 = vsyncpa [#allocation4], 0 }
  0x10   :  { %23 = vsyncpa [#allocation4 + $0x1], 0  ;;  %s1137_s21 = smov 0   ;;  %s1139_s22 = smov 0  }
  0x11   :  { %s1141_s23 = smov 0   ;;  %s1143_s24 = smov 0  }
  0x12 LB: > { %1612 = sst [smem:[#allocation23_spill]] %s1085_s22  ;;  %s1161_s28 = sadd.s32 4294967295, %s1093_s24   ;;  %s1093_s24 = sphi %s1143_s24, %s1643_s24   ;;  %s1089_s23 = sphi %s1141_s23, %s1646_s23   ;;  %s1085_s22 = sphi %s1139_s22, %s1645_s22   ;;  %s1081_s21 = sphi %s1137_s21, %s1644_s21  }
  0x13   : > { %1613 = sst [smem:[#allocation24_spill]] %s1089_s23  ;;  %p733_p0 = scmp.ge.s32.totalorder %s1093_s24, 1 }
  0x14   : > { %s1614_s1 = sld [smem:[#allocation28_spill]]  ;;  %p1598_p1 = scmp.eq.s32.totalorder %s1161_s28, 0 }
  0x15   : > { %p196_p2 = scmp.lt.s32.totalorder %s1093_s24, 3  ;;  %s1616_s3 = sld [smem:[#allocation30_spill]] }
  0x16   : > { %s1095_s10 = smov [#allocation2]   ;;  %s1618_s0 = sld [smem:[#allocation27_spill]] }
  0x17   : > { %p1167_p4 = pnand %p733_p0, %p196_p2 }
  0x19   : > { %s1615_s29 = scalar_select %p1167_p4, 1, 0 }
  0x1a   : > { %s218_s27 = sshll.u32 %s1614_s1, 4  ;;  %p831_p5 = pneg %p1167_p4  ;;  %s219_s27 = int_to_ptr.vmem [resolvable:$true] %s218_s27 }
  0x1b   : > { %s238_s8 = sshll.u32 %s1616_s3, 4  ;;  %s912_s13 = scalar_lea.vmem %s219_s27, 16  ;;  %s239_s8 = int_to_ptr.vmem [resolvable:$true] %s238_s8 }
  0x1c   : > { %p1178_p6 = pnand %p831_p5, %p1598_p1  ;;  %p913_p7 = scmp.ne.s32.totalorder %s219_s27, %s912_s13 }
  0x1d   : > { %p920_p11 = scmp.lt.s32.totalorder %s219_s27, %s219_s27  ;;  %p921_p12 = scmp.lt.s32.totalorder %s912_s13, %s912_s13 }
  0x1e   : > { %834 = dma.hbm_to_smem (!%p1178_p6), %s1618_s0, 16, %s1095_s10, [#allocation5]  }
  0x1f   : > { %p914_p8 = pneg %p1178_p6  ;;  %p922_p13 = por %p921_p12, %p920_p11 }
  0x21   : > { %p915_p9 = pnand %p914_p8, %p913_p7 }
  0x23   : > { %p916_p10 = pneg %p915_p9 }
  0x25   : > { %p923_p0 = pnand %p922_p13, %p916_p10 }
  0x27   : > { %926 = shalt.err (!%p923_p0)
}
  0x28   : > { %s1096_s14 = smov [#allocation7]   ;;  %s1097_s15 = smov [#allocation8]  }
  0x29   : > { %837 = dma.vmem_to_smem (!%p1178_p6), %s219_s27, 16, %s1096_s14, [#allocation6]  }
  0x2a   : > { %s1619_s2 = sld [smem:[#allocation29_spill]]  ;;  %s938_s18 = scalar_lea.vmem %s239_s8, 16 }
  0x2b   : > { %p939_p2 = scmp.ne.s32.totalorder %s239_s8, %s938_s18  ;;  %p946_p9 = scmp.lt.s32.totalorder %s239_s8, %s239_s8 }
  0x2c   : > { %p947_p10 = scmp.lt.s32.totalorder %s938_s18, %s938_s18 }
  0x2d   : > { %p941_p5 = pnand %p939_p2, %p914_p8 }
  0x2e   : > { %p948_p11 = por %p947_p10, %p946_p9 }
  0x2f   : > { %p942_p7 = pneg %p941_p5 }
  0x30   : > { %840 = dma.hbm_to_smem (!%p1178_p6), %s1619_s2, 64, %s1097_s15, [#allocation9]  }
  0x31   : > { %p949_p12 = pnand %p948_p11, %p942_p7 }
  0x33   : > { %952 = shalt.err (!%p949_p12)
}
  0x34   : > { %s1098_s19 = smov [#allocation10]   ;;  %s732_s20 = sadd.s32 4294967294, %s1093_s24  }
  0x35   : > { %843 = dma.vmem_to_smem (!%p1178_p6), %s239_s8, 16, %s1098_s19, [#allocation11]  }
  0x36   : > { %s1206_s25 = sadd.s32 1, %s1093_s24   ;;  %s120_s27 = sadd.s32 1, %s1089_s23 }
  0x37   : > { %1620 = sst [smem:[#allocation25_spill]] %s1206_s25  ;;  %s117_s26 = ssub.s32 %s1093_s24, %s1206_s25 }
  0x38   : > { %p118_p8 = scmp.eq.s32.totalorder %s117_s26, 0  ;;  %p127_p13 = scmp.ne.s32.totalorder %s1089_s23, %s1085_s22 }
  0x39   : > { %p128_p0 = scmp.eq.s32.totalorder %s1093_s24, 0  ;;  %p133_p2 = scmp.ne.s32.totalorder %s1085_s22, %s1081_s21 }
  0x3a   : > { %s1217_s30 = scalar_select %p118_p8, %s1089_s23, %s120_s27  }
  0x3b   : > { %p1219_p5 = por %p128_p0, %p127_p13  ;;  %p1225_p6 = por %p1598_p1, %p133_p2 }
  0x3c   : > { %1621 = sst [smem:[#allocation26_spill]] %s1217_s30  ;;  %p183_p7 = scmp.eq.s32.totalorder %s1161_s28, 1 }
  0x3d   : > { %s1623_s8 = scalar_select %p1225_p6, 1, 0 }
  0x3e   : > { %p189_p9 = scmp.eq.s32.totalorder %s732_s20, 1  ;;  %p859_p10 = scmp.lt.s32.totalorder %s1093_s24, 2 }
  0x3f   : > { %s1232_s9 = sand.u32 1, %s1089_s23   ;;  %p1234_p11 = por %p183_p7, %p127_p13 }
  0x40   : > { %p1238_p12 = por %p189_p9, %p133_p2  ;;  %s1597_s12 = sshll.u32 %s1232_s9, 6 }
  0x41   : > { %s1624_s10 = scalar_select %p1234_p11, 1, 0 }
  0x42   : > { %s1625_s11 = scalar_select %p1238_p12, 1, 0 }
  0x43   : > { %s806_s13 = sshll.u32 %s1093_s24, 10  ;;  %s1626_s4 = sld [smem:[#allocation31_spill]] }
  0x44   : > { %s253_s17 = scalar_lea.vmem [#allocation12], %s1597_s12  ;;  %p1255_p8 = pnand %p859_p10, %p1219_p5 }
  0x45   : > { %s261_s18 = sshll.u32 %s253_s17, 4  ;;  %s1628_s5 = sld [smem:[#allocation32_spill]]  ;;  %s1251_s18 = int_to_ptr.vmem [resolvable:$true] %s261_s18 }
  0x46   : > { %s250_s14 = scalar_lea.sflag [#allocation3], %s1232_s9  ;;  %p955_p0 = pneg %p1255_p8 }
  0x49   : > { %s1247_s16 = scalar_lea.hbm %s1626_s4, %s806_s13  ;;  %s958_s12 = scalar_lea.hbm %s1626_s4, 2048 }
  0x4a   : > { %s953_s15 = scalar_lea.hbm %s1247_s16, 1024  ;;  %p959_p5 = scmp.lt.s32.totalorder %s1247_s16, %s1626_s4 }
  0x4b   : > { %s1262_s27 = scalar_lea.hbm %s1628_s5, %s806_s13  ;;  %p954_p13 = scmp.ne.s32.totalorder %s1247_s16, %s953_s15 }
  0x4c   : > { %p960_p9 = scmp.lt.s32.totalorder %s958_s12, %s953_s15 }
  0x4d   : > { %p956_p2 = pnand %p955_p0, %p954_p13 }
  0x4e   : > { %p961_p10 = por %p960_p9, %p959_p5 }
  0x4f   : > { %p957_p7 = pneg %p956_p2 }
  0x51   : > { %p962_p3 = pnand %p961_p10, %p957_p7 }
  0x53   : > { %965 = shalt.err (!%p962_p3)
}
  0x54   : > { %s966_s13 = scalar_lea.vmem %s1251_s18, 1024  ;;  %s1099_s20 = smov [#allocation12]  }
  0x55   : > { %p967_p1 = scmp.ne.s32.totalorder %s1251_s18, %s966_s13  ;;  %s971_s26 = sshll.u32 %s1099_s20, 4  ;;  %s972_s26 = int_to_ptr.vmem [resolvable:$false] %s971_s26 }
  0x56   : > { %s973_s7 = scalar_lea.vmem %s972_s26, 2048  ;;  %p974_p12 = scmp.lt.s32.totalorder %s1251_s18, %s972_s26 }
  0x57   : > { %p969_p13 = pnand %p967_p1, %p955_p0  ;;  %p975_p11 = scmp.lt.s32.totalorder %s973_s7, %s966_s13 }
  0x59   : > { %p970_p2 = pneg %p969_p13  ;;  %p976_p6 = por %p975_p11, %p974_p12 }
  0x5b   : > { %p977_p5 = pnand %p976_p6, %p970_p2 }
  0x5d   : > { %980 = shalt.err (!%p977_p5)
}
  0x5e   : > { %847 = dma.hbm_to_vmem [thread:$0]  (!%p1255_p8), %s1247_s16, 1024, %s1251_s18, %s250_s14  }
  0x5f   : > { %s1629_s0 = sshll.u32 %s1232_s9, 6  ;;  %s269_s15 = scalar_lea.sflag [#allocation14], %s1232_s9 }
  0x60   : > { %s272_s1 = scalar_lea.vmem [#allocation13], %s1629_s0  ;;  %s981_s17 = scalar_lea.hbm %s1262_s27, 1024 }
  0x61   : > { %s280_s12 = sshll.u32 %s272_s1, 4  ;;  %p982_p1 = scmp.ne.s32.totalorder %s1262_s27, %s981_s17  ;;  %s281_s12 = int_to_ptr.vmem [resolvable:$true] %s280_s12 }
  0x62   : > { %s986_s26 = scalar_lea.hbm %s1628_s5, 2048  ;;  %p987_p11 = scmp.lt.s32.totalorder %s1262_s27, %s1628_s5 }
  0x63   : > { %p984_p3 = pnand %p982_p1, %p955_p0  ;;  %p988_p12 = scmp.lt.s32.totalorder %s986_s26, %s981_s17 }
  0x65   : > { %p985_p6 = pneg %p984_p3  ;;  %p989_p7 = por %p988_p12, %p987_p11 }
  0x67   : > { %p990_p9 = pnand %p989_p7, %p985_p6 }
  0x69   : > { %993 = shalt.err (!%p990_p9)
}
  0x6a   : > { %s994_s16 = scalar_lea.vmem %s281_s12, 1024  ;;  %s1100_s9 = smov [#allocation13]  }
  0x6b   : > { %p995_p10 = scmp.ne.s32.totalorder %s281_s12, %s994_s16  ;;  %s999_s18 = sshll.u32 %s1100_s9, 4  ;;  %s1000_s18 = int_to_ptr.vmem [resolvable:$false] %s999_s18 }
  0x6c   : > { %s1001_s14 = scalar_lea.vmem %s1000_s18, 2048  ;;  %p1002_p5 = scmp.lt.s32.totalorder %s281_s12, %s1000_s18 }
  0x6d   : > { %p997_p13 = pnand %p995_p10, %p955_p0  ;;  %p1003_p1 = scmp.lt.s32.totalorder %s1001_s14, %s994_s16 }
  0x6f   : > { %p998_p2 = pneg %p997_p13  ;;  %p1004_p3 = por %p1003_p1, %p1002_p5 }
  0x71   : > { %p1005_p4 = pnand %p1004_p3, %p998_p2 }
  0x73   : > { %1008 = shalt.err (!%p1005_p4)
}
  0x74   : > { %850 = dma.hbm_to_vmem [thread:$0]  (!%p1255_p8), %s1262_s27, 1024, %s281_s12, %s269_s15  }
  0x75   : > { %p1630_p6 = scmp.ne.s32.totalorder %s1615_s29, 0 }
  0x76   : > { %p1631_p11 = scmp.eq.s32.totalorder (!%p1630_p6), %s1161_s28, 0 }
  0x77   : > { %289 = sbr.rel (%p1630_p6) target bundleno = 218 (0xda), region = 44 }
  0x7c   : > { %1052 = dma.done.wait (%p1631_p11), [#allocation5], 16   ;;  %p1632_p0 = pmov %p1631_p11 }
  0x7e   : > { %1054 = vsyncadd (%p1632_p0), [#allocation5], 4294967280  ;;  %p1633_p12 = pmov %p1632_p0 }
  0x7f   : > { %p1634_p7 = pmov %p1632_p0 }
  0x80   : > { %1056 = dma.done.wait (%p1633_p12), [#allocation6], 16  }
  0x81   : > { %1058 = vsyncadd (%p1634_p7), [#allocation6], 4294967280  ;;  %p1635_p4 = pmov %p1632_p0 }
  0x82   : > { %p1636_p8 = pmov %p1632_p0 }
  0x83   : > { %1060 = dma.done.wait (%p1635_p4), [#allocation9], 64  }
  0x84   : > { %1062 = vsyncadd (%p1636_p8), [#allocation9], 4294967232  ;;  %p1637_p9 = pmov %p1632_p0 }
  0x85   : > { %p1638_p10 = pmov %p1632_p0 }
  0x86   : > { %1064 = dma.done.wait (%p1637_p9), [#allocation11], 16  }
  0x87   : > { %1066 = vsyncadd (%p1638_p10), [#allocation11], 4294967280  ;;  %s1329_s2 = sand.u32 1, %s1085_s22   ;;  %p1639_p13 = scmp.ne.s32.totalorder %s1623_s8, 0 }
  0x88   : > { %s750_s29 = sshll.u32 %s1329_s2, 6  ;;  %s308_s19 = scalar_lea.sflag [#allocation3], %s1329_s2 }
  0x89   : > { %s1333_s27 = scalar_lea.vmem [#allocation12], %s750_s29 }
  0x8a   : > { %1068 = dma.done.wait (%p1639_p13), %s308_s19, 1024  }
  0x8b   : > { %1070 = vsyncadd (%p1639_p13), %s308_s19, 4294966272  ;;  %s317_s0 = scalar_lea.sflag [#allocation14], %s1329_s2  ;;  %s1340_s1 = scalar_lea.vmem [#allocation13], %s750_s29 }
  0x8c   : > { %1072 = dma.done.wait (%p1639_p13), %s317_s0, 1024  }
  0x8d   : > { %1074 = vsyncadd (%p1639_p13), %s317_s0, 4294966272 }
  0x8e   : > { %325 = sfence }
  0x8f   : > { %s357_s12 = sld [smem:[#allocation2]]  ;;  %v359_v0 = vld [vmem:[%s1340_s1] ss:$8 sm:$0xf]  ;;  %p1640_p5 = scmp.ne.s32.totalorder %s1624_s10, 0 }
  0x90   : > { %s358_s15 = sld [smem:[#allocation7]]  ;;  %v360_v1 = vld [vmem:[%s1340_s1] ss:$8 sm:$0xf0] }
  0x91   : > { %v753_v2 = vld [vmem:[%s1340_s1 + $0x1] ss:$8 sm:$0xf]  ;;  %v755_v4 = vld [vmem:[%s1340_s1 + $0x2] ss:$8 sm:$0xf]  ;;  %v1354_v8 = vor.u32 %v360_v1, %v359_v0 }
  0x92   : > { %v754_v3 = vld [vmem:[%s1340_s1 + $0x1] ss:$8 sm:$0xf0]  ;;  %v756_v5 = vld [vmem:[%s1340_s1 + $0x2] ss:$8 sm:$0xf0] }
  0x93   : > { %v757_v6 = vld [vmem:[%s1340_s1 + $0x3] ss:$8 sm:$0xf]  ;;  %v374_v9 = vld [vmem:[%s1333_s27] ss:$8 sm:$0xf]  ;;  %v1358_v11 = vor.u32 %v754_v3, %v753_v2  ;;  %v1362_v16 = vor.u32 %v756_v5, %v755_v4 }
  0x94   : > { %v758_v7 = vld [vmem:[%s1340_s1 + $0x3] ss:$8 sm:$0xf0]  ;;  %v375_v10 = vld [vmem:[%s1333_s27] ss:$8 sm:$0xf0] }
  0x95   : > { %v376_v12 = vor.u32 %v375_v10, %v374_v9  ;;  %v377_v13 = vstv %s357_s12  ;;  %v759_v14 = vld [vmem:[%s1333_s27 + $0x1] ss:$8 sm:$0xf]  ;;  %v761_v19 = vld [vmem:[%s1333_s27 + $0x2] ss:$8 sm:$0xf]  ;;  %v1368_v24 = vor.u32 %v758_v7, %v757_v6 }
  0x96   : > { %v760_v15 = vld [vmem:[%s1333_s27 + $0x1] ss:$8 sm:$0xf0]  ;;  %v379_v17 = vstv %s358_s15  ;;  %v762_v20 = vld [vmem:[%s1333_s27 + $0x2] ss:$8 sm:$0xf0] }
  0x97   : > { %v385_v18 = vor.u32 %v760_v15, %v759_v14  ;;  %v392_v21 = vor.u32 %v762_v20, %v761_v19  ;;  %v763_v22 = vld [vmem:[%s1333_s27 + $0x3] ss:$8 sm:$0xf]  ;;  %v378_v25 = vmul.f32 %v377_v13, %v376_v12  ;;  %v380_v26 = vmul.f32 %v379_v17, %v1354_v8  ;;  %s1371_s8 = sld [smem:[#allocation10]] }
  0x98   : > { %v764_v23 = vld [vmem:[%s1333_s27 + $0x3] ss:$8 sm:$0xf0]  ;;  %v387_v29 = vmul.f32 %v379_v17, %v1358_v11  ;;  %s1374_s17 = sld [smem:[#allocation8]]  ;;  %v394_v31 = vmul.f32 %v379_v17, %v1362_v16  ;;  %v401_v34 = vmul.f32 %v379_v17, %v1368_v24 }
  0x99   : > { %v399_v27 = vor.u32 %v764_v23, %v763_v22  ;;  %v386_v28 = vmul.f32 %v385_v18, %v377_v13  ;;  %v393_v30 = vmul.f32 %v392_v21, %v377_v13  ;;  %s1377_s13 = sld [smem:[#allocation8 + $0x1]]  ;;  %v1381_v32 = vadd.f32 %v380_v26, %v378_v25  ;;  %v785_v53 = vld [vmem:[%s1340_s1 + $0x4] ss:$8 sm:$0xf] }
  0x9a   : > { %s1379_s20 = sld [smem:[#allocation8 + $0x2]]  ;;  %v786_v54 = vld [vmem:[%s1340_s1 + $0x4] ss:$8 sm:$0xf0] }
  0x9b   : > { %v400_v33 = vmul.f32 %v399_v27, %v377_v13  ;;  %s1384_s26 = sld [smem:[#allocation8 + $0x3]]  ;;  %v1386_v35 = vadd.f32 %v387_v29, %v386_v28  ;;  %v1390_v36 = vadd.f32 %v394_v31, %v393_v30  ;;  %v787_v55 = vld [vmem:[%s1340_s1 + $0x5] ss:$8 sm:$0xf]  ;;  %v1475_v15 = vor.u32 %v786_v54, %v785_v53 }
  0x9c   : > { %s1388_s7 = sld [smem:[#allocation10 + $0x1]]  ;;  %v788_v59 = vld [vmem:[%s1340_s1 + $0x5] ss:$8 sm:$0xf0] }
  0x9d   : > { %s1392_s16 = sld [smem:[#allocation8 + $0x80]]  ;;  %v407_v38 = vstv %s1371_s8  ;;  %v1398_v39 = vadd.f32 %v401_v34, %v400_v33  ;;  %v789_v63 = vld [vmem:[%s1340_s1 + $0x6] ss:$8 sm:$0xf]  ;;  %v1477_v17 = vor.u32 %v788_v59, %v787_v55  ;;  %s1101_s8 = smov [#allocation15]  }
  0x9e   : > { %v405_v37 = vstv %s1374_s17  ;;  %s1396_s9 = sld [smem:[#allocation8 + $0x81]]  ;;  %v790_v0 = vld [vmem:[%s1340_s1 + $0x6] ss:$8 sm:$0xf0]  ;;  %s1013_s17 = sshll.u32 %s1101_s8, 4  ;;  %s1014_s17 = int_to_ptr.vmem [resolvable:$false] %s1013_s17 }
  0x9f   : > { %v406_v40 = vmul.f32 %v405_v37, %v1381_v32  ;;  %v410_v41 = vstv %s1377_s13  ;;  %s1404_s18 = sld [smem:[#allocation8 + $0x82]]  ;;  %v793_v2 = vld [vmem:[%s1333_s27 + $0x4] ss:$8 sm:$0xf] }
  0xa0   : > { %v411_v42 = vmul.f32 %v410_v41, %v1386_v35  ;;  %v414_v43 = vstv %s1379_s20  ;;  %s1410_s14 = sld [smem:[#allocation8 + $0x83]]  ;;  %v794_v3 = vld [vmem:[%s1333_s27 + $0x4] ss:$8 sm:$0xf0] }
  0xa1   : > { %v408_v44 = vadd.f32 %v407_v38, %v406_v40  ;;  %v415_v45 = vmul.f32 %v414_v43, %v1390_v36  ;;  %v418_v46 = vstv %s1384_s26  ;;  %s1418_s29 = sld [smem:[#allocation10 + $0x2]]  ;;  %v795_v4 = vld [vmem:[%s1333_s27 + $0x5] ss:$8 sm:$0xf]  ;;  %v508_v29 = vor.u32 %v794_v3, %v793_v2 }
  0xa2   : > { %s1420_s19 = sld [smem:[#allocation8 + $0x100]]  ;;  %v419_v48 = vmul.f32 %v418_v46, %v1398_v39  ;;  %v428_v50 = vstv %s1388_s7  ;;  %v796_v5 = vld [vmem:[%s1333_s27 + $0x5] ss:$8 sm:$0xf0] }
  0xa3   : > { %v412_v47 = vadd.f32 %v411_v42, %v408_v44  ;;  %v426_v49 = vstv %s1392_s16  ;;  %s1427_s0 = sld [smem:[#allocation8 + $0x101]]  ;;  %v797_v12 = vld [vmem:[%s1333_s27 + $0x6] ss:$8 sm:$0xf]  ;;  %v517_v30 = vor.u32 %v796_v5, %v795_v4 }
  0xa4   : > { %v427_v51 = vmul.f32 %v426_v49, %v1381_v32  ;;  %v431_v52 = vstv %s1396_s9  ;;  %s1433_s12 = sld [smem:[#allocation8 + $0x102]]  ;;  %v798_v18 = vld [vmem:[%s1333_s27 + $0x6] ss:$8 sm:$0xf0] }
  0xa5   : > { %v416_v56 = vadd.f32 %v415_v45, %v412_v47  ;;  %v432_v57 = vmul.f32 %v431_v52, %v1386_v35  ;;  %v435_v58 = vstv %s1404_s18  ;;  %s1442_s15 = sld [smem:[#allocation8 + $0x103]]  ;;  %v799_v27 = vld [vmem:[%s1333_s27 + $0x7] ss:$8 sm:$0xf]  ;;  %v524_v31 = vor.u32 %v798_v18, %v797_v12 }
  0xa6   : > { %v429_v60 = vadd.f32 %v428_v50, %v427_v51  ;;  %v436_v61 = vmul.f32 %v435_v58, %v1390_v36  ;;  %v439_v62 = vstv %s1410_s14  ;;  %s1451_s3 = sld [smem:[#allocation10 + $0x3]]  ;;  %v800_v33 = vld [vmem:[%s1333_s27 + $0x7] ss:$8 sm:$0xf0]  ;;  %s581_s27 = scalar_lea.sflag [#allocation4], %s1329_s2 }
  0xa7   : > { %v420_v1 = vadd.f32 %v419_v48, %v416_v56  ;;  %s1455_s4 = sld [smem:[#allocation8 + $0x180]]  ;;  %v440_v7 = vmul.f32 %v439_v62, %v1398_v39  ;;  %v449_v10 = vstv %s1418_s29  ;;  %v791_v45 = vld [vmem:[%s1340_s1 + $0x7] ss:$8 sm:$0xf]  ;;  %v531_v59 = vor.u32 %v800_v33, %v799_v27 }
  0xa8   : > { %v433_v6 = vadd.f32 %v432_v57, %v429_v60  ;;  %v447_v9 = vstv %s1420_s19  ;;  %s1466_s5 = sld [smem:[#allocation8 + $0x181]]  ;;  %v792_v54 = vld [vmem:[%s1340_s1 + $0x7] ss:$8 sm:$0xf0] }
  0xa9   : > { %v448_v13 = vmul.f32 %v447_v9, %v1381_v32  ;;  %v452_v14 = vstv %s1427_s0  ;;  %s1473_s30 = sld [smem:[#allocation8 + $0x182]]  ;;  %v421_v19 = vsub.f32 %v1354_v8, %v420_v1  ;;  %v1493_v8 = vor.u32 %v790_v0, %v789_v63 }
  0xaa   : > { %v437_v20 = vadd.f32 %v436_v61, %v433_v6  ;;  %v453_v21 = vmul.f32 %v452_v14, %v1386_v35  ;;  %v456_v22 = vstv %s1433_s12  ;;  %s1485_s23 = sld [smem:[#allocation8 + $0x183]]  ;;  %v1512_v3 = vor.u32 %v792_v54, %v791_v45 }
  0xab   : > { %v450_v23 = vadd.f32 %v449_v10, %v448_v13  ;;  %v457_v25 = vmul.f32 %v456_v22, %v1390_v36  ;;  %v460_v26 = vstv %s1442_s15  ;;  %s783_s22 = sld [smem:[#allocation2 + $0x1]]  ;;  %v422_v47 = vand.u32 2147483647, %v421_v19 }
  0xac   : > { %v441_v28 = vadd.f32 %v440_v7, %v437_v20  ;;  %s784_s25 = sld [smem:[#allocation7 + $0x1]]  ;;  %v461_v40 = vmul.f32 %v460_v26, %v1398_v39  ;;  %v470_v44 = vstv %s1451_s3  ;;  %s752_s3 = sshll.u32 %s1329_s2, 3 }
  0xad   : > { %v454_v34 = vadd.f32 %v453_v21, %v450_v23  ;;  %v468_v42 = vstv %s1455_s4  ;;  %s808_s4 = sshll.u32 %s1161_s28, 7  ;;  %s1015_s28 = scalar_lea.vmem %s1014_s17, 256 }
  0xae   : > { %v442_v48 = vsub.f32 %v1358_v11, %v441_v28  ;;  %v469_v51 = vmul.f32 %v468_v42, %v1381_v32  ;;  %v473_v53 = vstv %s1466_s5  ;;  %s354_s5 = scalar_lea.vmem [#allocation15], %s752_s3 }
  0xaf   : > { %v458_v55 = vadd.f32 %v457_v25, %v454_v34  ;;  %v474_v56 = vmul.f32 %v473_v53, %v1386_v35  ;;  %v477_v57 = vstv %s1473_s30  ;;  %s593_s30 = scalar_lea.hbm %s1596_s6, %s808_s4 }
  0xb0   : > { %v443_v60 = vand.u32 2147483647, %v442_v48  ;;  %v471_v61 = vadd.f32 %v470_v44, %v469_v51  ;;  %v478_v63 = vmul.f32 %v477_v57, %v1390_v36  ;;  %v481_v0 = vstv %s1485_s23 }
  0xb1   : > { %v462_v1 = vadd.f32 %v461_v40, %v458_v55  ;;  %v482_v2 = vmul.f32 %v481_v0, %v1398_v39  ;;  %v509_v11 = vstv %s783_s22  ;;  %s595_s22 = sshll.u32 %s354_s5, 4  ;;  %s596_s22 = int_to_ptr.vmem [resolvable:$true] %s595_s22 }
  0xb2   : > { %v444_v4 = vadd.f32 %v443_v60, %v422_v47  ;;  %v475_v32 = vadd.f32 %v474_v56, %v471_v61  ;;  %v510_v5 = vmul.f32 %v509_v11, %v508_v29  ;;  %v511_v6 = vstv %s784_s25  ;;  %s1009_s1 = scalar_lea.vmem %s596_s22, 128  ;;  %p1016_p6 = scmp.lt.s32.totalorder %s596_s22, %s1014_s17 }
  0xb3   : > { %v463_v35 = vsub.f32 %v1362_v16, %v462_v1  ;;  %v512_v7 = vmul.f32 %v511_v6, %v1475_v15  ;;  %v518_v12 = vmul.f32 %v517_v30, %v509_v11  ;;  %v519_v36 = vmul.f32 %v511_v6, %v1477_v17  ;;  %p1010_p2 = scmp.ne.s32.totalorder %s596_s22, %s1009_s1  ;;  %p1017_p11 = scmp.lt.s32.totalorder %s1015_s28, %s1009_s1 }
  0xb4   : > { %v479_v13 = vadd.f32 %v478_v63, %v475_v32  ;;  %v525_v39 = vmul.f32 %v524_v31, %v509_v11  ;;  %v526_v18 = vmul.f32 %v511_v6, %v1493_v8  ;;  %v532_v19 = vmul.f32 %v531_v59, %v509_v11 }
  0xb5   : > { %v464_v20 = vand.u32 2147483647, %v463_v35  ;;  %v513_v21 = vadd.f32 %v512_v7, %v510_v5  ;;  %v520_v16 = vadd.f32 %v519_v36, %v518_v12  ;;  %v533_v23 = vmul.f32 %v511_v6, %v1512_v3  ;;  %p1011_p1 = pnand %p1010_p2, %p1640_p5  ;;  %p1018_p0 = por %p1017_p11, %p1016_p6 }
  0xb6   : > { %v483_v25 = vadd.f32 %v482_v2, %v479_v13  ;;  %v527_v27 = vadd.f32 %v526_v18, %v525_v39 }
  0xb7   : > { %v534_v28 = vadd.f32 %v533_v23, %v532_v19  ;;  %v535_v29 = vmul.f32 %v513_v21, %v405_v37  ;;  %v537_v30 = vmul.f32 %v520_v16, %v410_v41  ;;  %v546_v31 = vmul.f32 %v513_v21, %v426_v49  ;;  %p1012_p3 = pneg %p1011_p1 }
  0xb8   : > { %v548_v33 = vmul.f32 %v520_v16, %v431_v52  ;;  %v465_v34 = vadd.f32 %v464_v20, %v444_v4  ;;  %v484_v40 = vsub.f32 %v1368_v24, %v483_v25  ;;  %v539_v47 = vmul.f32 %v527_v27, %v414_v43 }
  0xb9   : > { %v536_v45 = vadd.f32 %v535_v29, %v407_v38  ;;  %v547_v48 = vadd.f32 %v546_v31, %v428_v50  ;;  %v550_v51 = vmul.f32 %v527_v27, %v435_v58  ;;  %v557_v37 = vmul.f32 %v513_v21, %v447_v9  ;;  %p1019_p12 = pnand %p1018_p0, %p1012_p3 }
  0xba   : > { %v559_v41 = vmul.f32 %v520_v16, %v452_v14  ;;  %v541_v54 = vmul.f32 %v534_v28, %v418_v46  ;;  %v552_v52 = vmul.f32 %v534_v28, %v439_v62  ;;  %v568_v55 = vmul.f32 %v513_v21, %v468_v42 }
  0xbb   : > { %v538_v49 = vadd.f32 %v537_v30, %v536_v45  ;;  %v549_v24 = vadd.f32 %v548_v33, %v547_v48  ;;  %v558_v38 = vadd.f32 %v557_v37, %v449_v10  ;;  %v561_v43 = vmul.f32 %v527_v27, %v456_v22 }
  0xbc   : > { %v570_v56 = vmul.f32 %v520_v16, %v473_v53  ;;  %v485_v50 = vand.u32 2147483647, %v484_v40  ;;  %v569_v59 = vadd.f32 %v568_v55, %v470_v44  ;;  %v572_v9 = vmul.f32 %v527_v27, %v477_v57 }
  0xbd   : > { %v540_v58 = vadd.f32 %v539_v47, %v538_v49  ;;  %v551_v60 = vadd.f32 %v550_v51, %v549_v24  ;;  %v560_v61 = vadd.f32 %v559_v41, %v558_v38  ;;  %v563_v14 = vmul.f32 %v534_v28, %v460_v26 }
  0xbe   : > { %v571_v46 = vadd.f32 %v570_v56, %v569_v59  ;;  %v574_v1 = vmul.f32 %v534_v28, %v481_v0  ;;  %v486_v2 = vadd.f32 %v485_v50, %v465_v34 }
  0xbf   : > { %v542_v63 = vadd.f32 %v541_v54, %v540_v58  ;;  %v553_v62 = vadd.f32 %v552_v52, %v551_v60  ;;  %v562_v42 = vadd.f32 %v561_v43, %v560_v61 }
  0xc0   : > { %v573_v22 = vadd.f32 %v572_v9, %v571_v46 }
  0xc1   : > { %v543_v10 = vsub.f32 %v1475_v15, %v542_v63  ;;  %v554_v53 = vsub.f32 %v1477_v17, %v553_v62  ;;  %v564_v11 = vadd.f32 %v563_v14, %v562_v42 }
  0xc2   : > { %v575_v57 = vadd.f32 %v574_v1, %v573_v22 }
  0xc3   : > { %v544_v44 = vand.u32 2147483647, %v543_v10  ;;  %v555_v4 = vand.u32 2147483647, %v554_v53  ;;  %v565_v26 = vsub.f32 %v1493_v8, %v564_v11 }
  0xc4   : > { %v576_v0 = vsub.f32 %v1512_v3, %v575_v57 }
  0xc5   : > { %v545_v32 = vadd.f32 %v544_v44, %v486_v2  ;;  %v566_v5 = vand.u32 2147483647, %v565_v26 }
  0xc6   : > { %v577_v35 = vand.u32 2147483647, %v576_v0 }
  0xc7   : > { %v556_v6 = vadd.f32 %v555_v4, %v545_v32 }
  0xc9   : > { %v567_v15 = vadd.f32 %v566_v5, %v556_v6 }
  0xcb   : > { %v578_v7 = vadd.f32 %v577_v35, %v567_v15 }
  0xcd   : > { %579 = vst [vmem:[%s354_s5] sm:$0xff] %v578_v7 }
  0xce   : > { %1022 = shalt.err (!%p1019_p12)
}
  0xcf   : > { %s1023_s13 = scalar_lea.hbm %s593_s30, 128  ;;  %s1027_s26 = scalar_lea.hbm %s1596_s6, 256 }
  0xd0   : > { %p1024_p7 = scmp.ne.s32.totalorder %s593_s30, %s1023_s13  ;;  %p1028_p9 = scmp.lt.s32.totalorder %s593_s30, %s1596_s6 }
  0xd1   : > { %p1029_p10 = scmp.lt.s32.totalorder %s1027_s26, %s1023_s13 }
  0xd2   : > { %p1025_p4 = pnand %p1024_p7, %p1640_p5 }
  0xd3   : > { %p1030_p13 = por %p1029_p10, %p1028_p9 }
  0xd4   : > { %p1026_p8 = pneg %p1025_p4 }
  0xd6   : > { %p1031_p2 = pnand %p1030_p13, %p1026_p8 }
  0xd8   : > { %1034 = shalt.err (!%p1031_p2)
}
  0xd9   : > { %829 = dma.vmem_to_hbm [thread:$0]  (%p1640_p5), %s596_s22, 128, %s593_s30, %s581_s27  }
  0xda PF: > { %s607_s9 = sand.u32 1, %s1081_s21   ;;  %p1641_p1 = scmp.ne.s32.totalorder %s1625_s11, 0 }
  0xdb   : > { %p1642_p3 = scmp.ge.s32.totalorder %s1093_s24, 2  ;;  %s608_s18 = scalar_lea.sflag [#allocation4], %s607_s9 }
  0xdd   : > { %p852_p6 = pnand %p1642_p3, %p1641_p1 }
  0xdf   : > { %p853_p11 = pneg %p852_p6 }
  0xe1   : > { %1076 = dma.done.wait (%p853_p11), %s608_s18, 128  }
  0xe2   : > { %1078 = vsyncadd (%p853_p11), %s608_s18, 4294967168  ;;  %s1643_s24 = sld [smem:[#allocation25_spill]] }
  0xe3   : > { %s1644_s21 = sld [smem:[#allocation23_spill]] }
  0xe4   : > { %s1645_s22 = sld [smem:[#allocation24_spill]] }
  0xe5   : > { %s1646_s23 = sld [smem:[#allocation26_spill]] }
  0xe8   : > { %p26_p0 = scmp.ge.s32.totalorder %s1643_s24, 4  }
  0xea   :  { %28 = sbr.rel (!%p26_p0) target bundleno = 18 (0x12), region = 134 }
  0xef   :  { %613 = vsyncpa [#allocation3], 1 }
  0xf0   :  { %615 = vsyncpa [#allocation3 + $0x1], 1 }
  0xf1   :  { %616 = vsyncpa [#allocation14], 1 }
  0xf2   :  { %618 = vsyncpa [#allocation14 + $0x1], 1 }
  0xf3   :  { %619 = vsyncpa [#allocation4], 1 }
  0xf4   :  { %621 = vsyncpa [#allocation4 + $0x1], 1 }
  0xf5   :  { %622 = vsyncpa [#allocation5], 1 }
  0xf6   :  { %624 = vsyncpa [#allocation5 + $0x1], 1 }
  0xf7   :  { %625 = vsyncpa [#allocation9], 1 }
  0xf8   :  { %626 = vsyncpa [#allocation6], 1 }
  0xf9   :  { %628 = vsyncpa [#allocation6 + $0x1], 1 }
  0xfa   :  { %629 = vsyncpa [#allocation11], 1 }

</bundles_post_ra>
